<compile_context>
chip_gen: v7x
topology: tpu7x:2x2x1
jax: 0.10.0
libtpu: 0.0.40
codegen_flags: <defaults>
</compile_context>

<pallas_src>
import functools

import jax
import jax.numpy as jnp
from jax.experimental import pallas as pl
from jax.experimental.pallas import tpu as pltpu


def _bce_elem(p, y):
    # Elementwise nn.BCELoss term: -(y*log(p) + (1-y)*log(1-p)),
    # with each log clamped at -100 (matches PyTorch BCELoss clamping).
    logp = jnp.maximum(jnp.log(p), -100.0)
    log1mp = jnp.maximum(jnp.log(1.0 - p), -100.0)
    return -(y * logp + (1.0 - y) * log1mp)


def _lfav_kernel(event_weight, inv_bc, inv_be,
                 s1v_ref, s2v_ref, s3v_ref, s1a_ref, s2a_ref, s3a_ref,
                 yv_ref, ya_ref, vfeat_ref, afeat_ref, w_ref, b_ref,
                 out_ref):
    # Load every ref exactly once and reuse.
    yv = yv_ref[...]                         # (B, C)
    ya = ya_ref[...]                         # (B, C)
    s2v = s2v_ref[...]                       # (B, C) — feeds BCE and F1 rounding
    s2a = s2a_ref[...]                       # (B, C)

    # ---- fused stage BCE: (l1 + l2 + l3), one elementwise pass per modality,
    # one full reduction, one divide by B*C ---------------------------------
    bce_v = (_bce_elem(s1v_ref[...], yv) + _bce_elem(s2v, yv)
             + _bce_elem(s3v_ref[...], yv))                     # (B, C)
    bce_a = (_bce_elem(s1a_ref[...], ya) + _bce_elem(s2a, ya)
             + _bce_elem(s3a_ref[...], ya))                     # (B, C)
    l123 = jnp.sum(bce_v + bce_a) * inv_bc                      # == l1+l2+l3

    # ---- event loss: diagonal-only tap_nn + sigmoid + BCE, two per-modality
    # partial sums (no concatenate) ------------------------------------------
    w = w_ref[...]                           # (E, D)  nn.Linear (out, in) layout
    wb = w[None, :, :]                       # built once, reused for both modalities
    bias = b_ref[...]                        # (1, E)
    # logits[b, e] = sum_d feat[b, e, d] * W[e, d] + bias[e]
    logit_v = jnp.sum(vfeat_ref[...] * wb, axis=-1) + bias      # (B, E)
    logit_a = jnp.sum(afeat_ref[...] * wb, axis=-1) + bias      # (B, E)
    ev_bce = (_bce_elem(jax.nn.sigmoid(logit_v), yv)
              + _bce_elem(jax.nn.sigmoid(logit_a), ya))         # (B, E), E == C
    le = jnp.sum(ev_bce) * inv_be                               # == lev + lea

    total_loss = (1.0 - event_weight) * l123 + event_weight * le

    # ---- F1 metrics (stage-2 predictions) ----------------------------------
    rv = jnp.round(s2v)
    ra = jnp.round(s2a)
    avp = jnp.logical_or(rv != 0.0, ra != 0.0).astype(jnp.float32)
    avl = jnp.logical_or(yv != 0.0, ya != 0.0).astype(jnp.float32)

    eps = 1e-05

    def _f1(pred, label):
        # tp + fp == sum(pred), tp + fn == sum(label); no eps in the
        # precision/recall denominators, matching the reference exactly.
        tp = jnp.sum(pred * label)
        prec = tp / jnp.sum(pred)
        rec = tp / jnp.sum(label)
        return 2.0 * (prec * rec) / (prec + rec + eps)

    out_ref[0] = total_loss
    out_ref[1] = _f1(rv, yv)
    out_ref[2] = _f1(ra, ya)
    out_ref[3] = _f1(avp, avl)


def lfav_loss(s1v, s1a, s2v, s2a, s3v, s3a, yv, ya,
              video_event_features, audio_event_features,
              tap_w, tap_b, event_weight=0.3):
    """Returns (total_loss, f1_video, f1_audio, f1_av) as f32 scalars.

    tap_w: (num_classes, feature_dim)  -- PyTorch nn.Linear weight layout.
    tap_b: (num_classes,) or (1, num_classes).
    """
    B, E, D = video_event_features.shape
    C = yv.shape[1]
    assert E == C, "num_events must equal num_classes (module picks pred[:, event])"

    f32 = jnp.float32
    # No wrapper-side stack/concatenate: everything goes to the kernel as-is.
    # (.astype is a no-op for already-f32 inputs.)
    args = (s1v.astype(f32), s2v.astype(f32), s3v.astype(f32),
            s1a.astype(f32), s2a.astype(f32), s3a.astype(f32),
            yv.astype(f32), ya.astype(f32),
            video_event_features.astype(f32), audio_event_features.astype(f32),
            tap_w.astype(f32),                       # (C, D): no transpose needed
            jnp.reshape(tap_b, (1, C)).astype(f32))  # free metadata reshape

    vmem = pl.BlockSpec(memory_space=pltpu.MemorySpace.VMEM)
    kernel = functools.partial(_lfav_kernel, float(event_weight),
                               1.0 / float(B * C), 1.0 / float(B * E))
    out = pl.pallas_call(
        kernel,
        out_shape=jax.ShapeDtypeStruct((4,), jnp.float32),
        in_specs=[vmem] * len(args),
        out_specs=pl.BlockSpec(memory_space=pltpu.MemorySpace.SMEM),
    )(*args)
    return out[0], out[1], out[2], out[3]


if __name__ == "__main__":
    B, C, D = 2, 8, 32          # batch, num_classes (== num_events), feature_dim
    E = C

    key = jax.random.PRNGKey(0)
    keys = jax.random.split(key, 12)
    sig = jax.nn.sigmoid

    # predictions are sigmoid outputs in (0, 1)
    s1v = sig(jax.random.normal(keys[0], (B, C), jnp.float32))
    s1a = sig(jax.random.normal(keys[1], (B, C), jnp.float32))
    s2v = sig(jax.random.normal(keys[2], (B, C), jnp.float32))
    s2a = sig(jax.random.normal(keys[3], (B, C), jnp.float32))
    s3v = sig(jax.random.normal(keys[4], (B, C), jnp.float32))
    s3a = sig(jax.random.normal(keys[5], (B, C), jnp.float32))

    # multi-hot labels
    yv = (jax.random.uniform(keys[6], (B, C)) > 0.5).astype(jnp.float32)
    ya = (jax.random.uniform(keys[7], (B, C)) > 0.5).astype(jnp.float32)

    vfeat = jax.random.normal(keys[8], (B, E, D), jnp.float32)
    afeat = jax.random.normal(keys[9], (B, E, D), jnp.float32)

    # tap_nn FC parameters in PyTorch nn.Linear layout: weight (C, D), bias (1, C)
    tap_w = 0.1 * jax.random.normal(keys[10], (C, D), jnp.float32)
    tap_b = 0.1 * jax.random.normal(keys[11], (1, C), jnp.float32)

    total_loss, f1_v, f1_a, f1_av = lfav_loss(
        s1v, s1a, s2v, s2a, s3v, s3a, yv, ya, vfeat, afeat, tap_w, tap_b,
        event_weight=0.3)
    jax.block_until_ready((total_loss, f1_v, f1_a, f1_av))
    print("KERNEL_OK")
</pallas_src>

<mosaic_0001>
module attributes {stable_mosaic.version = 11 : i64} {
  func.func @_lfav_kernel(%arg0: memref<2x8xf32, #tpu.memory_space<vmem>>, %arg1: memref<2x8xf32, #tpu.memory_space<vmem>>, %arg2: memref<2x8xf32, #tpu.memory_space<vmem>>, %arg3: memref<2x8xf32, #tpu.memory_space<vmem>>, %arg4: memref<2x8xf32, #tpu.memory_space<vmem>>, %arg5: memref<2x8xf32, #tpu.memory_space<vmem>>, %arg6: memref<2x8xf32, #tpu.memory_space<vmem>>, %arg7: memref<2x8xf32, #tpu.memory_space<vmem>>, %arg8: memref<2x8x32xf32, #tpu.memory_space<vmem>>, %arg9: memref<2x8x32xf32, #tpu.memory_space<vmem>>, %arg10: memref<8x32xf32, #tpu.memory_space<vmem>>, %arg11: memref<1x8xf32, #tpu.memory_space<vmem>>, %arg12: memref<4xf32, #tpu.memory_space<smem>>) attributes {dimension_semantics = [], scalar_prefetch = 0 : i64, scratch_operands = 0 : i64, tpu.core_type = #tpu.core_type<tc>} {
    %c0 = arith.constant 0 : index
    %c0_0 = arith.constant 0 : index
    %0 = vector.load %arg6[%c0, %c0_0] : memref<2x8xf32, #tpu.memory_space<vmem>>, vector<2x8xf32>
    %c0_1 = arith.constant 0 : index
    %c0_2 = arith.constant 0 : index
    %1 = vector.load %arg7[%c0_1, %c0_2] : memref<2x8xf32, #tpu.memory_space<vmem>>, vector<2x8xf32>
    %c0_3 = arith.constant 0 : index
    %c0_4 = arith.constant 0 : index
    %2 = vector.load %arg1[%c0_3, %c0_4] : memref<2x8xf32, #tpu.memory_space<vmem>>, vector<2x8xf32>
    %c0_5 = arith.constant 0 : index
    %c0_6 = arith.constant 0 : index
    %3 = vector.load %arg4[%c0_5, %c0_6] : memref<2x8xf32, #tpu.memory_space<vmem>>, vector<2x8xf32>
    %c0_7 = arith.constant 0 : index
    %c0_8 = arith.constant 0 : index
    %4 = vector.load %arg0[%c0_7, %c0_8] : memref<2x8xf32, #tpu.memory_space<vmem>>, vector<2x8xf32>
    %5 = math.log %4 : vector<2x8xf32>
    %cst = arith.constant -1.000000e+02 : f32
    %6 = vector.broadcast %cst : f32 to vector<2x8xf32>
    %7 = arith.maximumf %5, %6 : vector<2x8xf32>
    %cst_9 = arith.constant 1.000000e+00 : f32
    %8 = vector.broadcast %cst_9 : f32 to vector<2x8xf32>
    %9 = arith.subf %8, %4 : vector<2x8xf32>
    %10 = math.log %9 : vector<2x8xf32>
    %cst_10 = arith.constant -1.000000e+02 : f32
    %11 = vector.broadcast %cst_10 : f32 to vector<2x8xf32>
    %12 = arith.maximumf %10, %11 : vector<2x8xf32>
    %13 = arith.mulf %0, %7 : vector<2x8xf32>
    %cst_11 = arith.constant 1.000000e+00 : f32
    %14 = vector.broadcast %cst_11 : f32 to vector<2x8xf32>
    %15 = arith.subf %14, %0 : vector<2x8xf32>
    %16 = arith.mulf %15, %12 : vector<2x8xf32>
    %17 = arith.addf %13, %16 : vector<2x8xf32>
    %cst_12 = arith.constant 0.000000e+00 : f32
    %18 = vector.broadcast %cst_12 : f32 to vector<2x8xf32>
    %19 = arith.subf %18, %17 : vector<2x8xf32>
    %20 = math.log %2 : vector<2x8xf32>
    %cst_13 = arith.constant -1.000000e+02 : f32
    %21 = vector.broadcast %cst_13 : f32 to vector<2x8xf32>
    %22 = arith.maximumf %20, %21 : vector<2x8xf32>
    %cst_14 = arith.constant 1.000000e+00 : f32
    %23 = vector.broadcast %cst_14 : f32 to vector<2x8xf32>
    %24 = arith.subf %23, %2 : vector<2x8xf32>
    %25 = math.log %24 : vector<2x8xf32>
    %cst_15 = arith.constant -1.000000e+02 : f32
    %26 = vector.broadcast %cst_15 : f32 to vector<2x8xf32>
    %27 = arith.maximumf %25, %26 : vector<2x8xf32>
    %28 = arith.mulf %0, %22 : vector<2x8xf32>
    %cst_16 = arith.constant 1.000000e+00 : f32
    %29 = vector.broadcast %cst_16 : f32 to vector<2x8xf32>
    %30 = arith.subf %29, %0 : vector<2x8xf32>
    %31 = arith.mulf %30, %27 : vector<2x8xf32>
    %32 = arith.addf %28, %31 : vector<2x8xf32>
    %cst_17 = arith.constant 0.000000e+00 : f32
    %33 = vector.broadcast %cst_17 : f32 to vector<2x8xf32>
    %34 = arith.subf %33, %32 : vector<2x8xf32>
    %35 = arith.addf %19, %34 : vector<2x8xf32>
    %c0_18 = arith.constant 0 : index
    %c0_19 = arith.constant 0 : index
    %36 = vector.load %arg2[%c0_18, %c0_19] : memref<2x8xf32, #tpu.memory_space<vmem>>, vector<2x8xf32>
    %37 = math.log %36 : vector<2x8xf32>
    %cst_20 = arith.constant -1.000000e+02 : f32
    %38 = vector.broadcast %cst_20 : f32 to vector<2x8xf32>
    %39 = arith.maximumf %37, %38 : vector<2x8xf32>
    %cst_21 = arith.constant 1.000000e+00 : f32
    %40 = vector.broadcast %cst_21 : f32 to vector<2x8xf32>
    %41 = arith.subf %40, %36 : vector<2x8xf32>
    %42 = math.log %41 : vector<2x8xf32>
    %cst_22 = arith.constant -1.000000e+02 : f32
    %43 = vector.broadcast %cst_22 : f32 to vector<2x8xf32>
    %44 = arith.maximumf %42, %43 : vector<2x8xf32>
    %45 = arith.mulf %0, %39 : vector<2x8xf32>
    %cst_23 = arith.constant 1.000000e+00 : f32
    %46 = vector.broadcast %cst_23 : f32 to vector<2x8xf32>
    %47 = arith.subf %46, %0 : vector<2x8xf32>
    %48 = arith.mulf %47, %44 : vector<2x8xf32>
    %49 = arith.addf %45, %48 : vector<2x8xf32>
    %cst_24 = arith.constant 0.000000e+00 : f32
    %50 = vector.broadcast %cst_24 : f32 to vector<2x8xf32>
    %51 = arith.subf %50, %49 : vector<2x8xf32>
    %52 = arith.addf %35, %51 : vector<2x8xf32>
    %c0_25 = arith.constant 0 : index
    %c0_26 = arith.constant 0 : index
    %53 = vector.load %arg3[%c0_25, %c0_26] : memref<2x8xf32, #tpu.memory_space<vmem>>, vector<2x8xf32>
    %54 = math.log %53 : vector<2x8xf32>
    %cst_27 = arith.constant -1.000000e+02 : f32
    %55 = vector.broadcast %cst_27 : f32 to vector<2x8xf32>
    %56 = arith.maximumf %54, %55 : vector<2x8xf32>
    %cst_28 = arith.constant 1.000000e+00 : f32
    %57 = vector.broadcast %cst_28 : f32 to vector<2x8xf32>
    %58 = arith.subf %57, %53 : vector<2x8xf32>
    %59 = math.log %58 : vector<2x8xf32>
    %cst_29 = arith.constant -1.000000e+02 : f32
    %60 = vector.broadcast %cst_29 : f32 to vector<2x8xf32>
    %61 = arith.maximumf %59, %60 : vector<2x8xf32>
    %62 = arith.mulf %1, %56 : vector<2x8xf32>
    %cst_30 = arith.constant 1.000000e+00 : f32
    %63 = vector.broadcast %cst_30 : f32 to vector<2x8xf32>
    %64 = arith.subf %63, %1 : vector<2x8xf32>
    %65 = arith.mulf %64, %61 : vector<2x8xf32>
    %66 = arith.addf %62, %65 : vector<2x8xf32>
    %cst_31 = arith.constant 0.000000e+00 : f32
    %67 = vector.broadcast %cst_31 : f32 to vector<2x8xf32>
    %68 = arith.subf %67, %66 : vector<2x8xf32>
    %69 = math.log %3 : vector<2x8xf32>
    %cst_32 = arith.constant -1.000000e+02 : f32
    %70 = vector.broadcast %cst_32 : f32 to vector<2x8xf32>
    %71 = arith.maximumf %69, %70 : vector<2x8xf32>
    %cst_33 = arith.constant 1.000000e+00 : f32
    %72 = vector.broadcast %cst_33 : f32 to vector<2x8xf32>
    %73 = arith.subf %72, %3 : vector<2x8xf32>
    %74 = math.log %73 : vector<2x8xf32>
    %cst_34 = arith.constant -1.000000e+02 : f32
    %75 = vector.broadcast %cst_34 : f32 to vector<2x8xf32>
    %76 = arith.maximumf %74, %75 : vector<2x8xf32>
    %77 = arith.mulf %1, %71 : vector<2x8xf32>
    %cst_35 = arith.constant 1.000000e+00 : f32
    %78 = vector.broadcast %cst_35 : f32 to vector<2x8xf32>
    %79 = arith.subf %78, %1 : vector<2x8xf32>
    %80 = arith.mulf %79, %76 : vector<2x8xf32>
    %81 = arith.addf %77, %80 : vector<2x8xf32>
    %cst_36 = arith.constant 0.000000e+00 : f32
    %82 = vector.broadcast %cst_36 : f32 to vector<2x8xf32>
    %83 = arith.subf %82, %81 : vector<2x8xf32>
    %84 = arith.addf %68, %83 : vector<2x8xf32>
    %c0_37 = arith.constant 0 : index
    %c0_38 = arith.constant 0 : index
    %85 = vector.load %arg5[%c0_37, %c0_38] : memref<2x8xf32, #tpu.memory_space<vmem>>, vector<2x8xf32>
    %86 = math.log %85 : vector<2x8xf32>
    %cst_39 = arith.constant -1.000000e+02 : f32
    %87 = vector.broadcast %cst_39 : f32 to vector<2x8xf32>
    %88 = arith.maximumf %86, %87 : vector<2x8xf32>
    %cst_40 = arith.constant 1.000000e+00 : f32
    %89 = vector.broadcast %cst_40 : f32 to vector<2x8xf32>
    %90 = arith.subf %89, %85 : vector<2x8xf32>
    %91 = math.log %90 : vector<2x8xf32>
    %cst_41 = arith.constant -1.000000e+02 : f32
    %92 = vector.broadcast %cst_41 : f32 to vector<2x8xf32>
    %93 = arith.maximumf %91, %92 : vector<2x8xf32>
    %94 = arith.mulf %1, %88 : vector<2x8xf32>
    %cst_42 = arith.constant 1.000000e+00 : f32
    %95 = vector.broadcast %cst_42 : f32 to vector<2x8xf32>
    %96 = arith.subf %95, %1 : vector<2x8xf32>
    %97 = arith.mulf %96, %93 : vector<2x8xf32>
    %98 = arith.addf %94, %97 : vector<2x8xf32>
    %cst_43 = arith.constant 0.000000e+00 : f32
    %99 = vector.broadcast %cst_43 : f32 to vector<2x8xf32>
    %100 = arith.subf %99, %98 : vector<2x8xf32>
    %101 = arith.addf %84, %100 : vector<2x8xf32>
    %102 = arith.addf %52, %101 : vector<2x8xf32>
    %103 = vector.shape_cast %102 : vector<2x8xf32> to vector<1x2x8xf32>
    %cst_44 = arith.constant dense<0.000000e+00> : vector<1xf32>
    %104 = vector.multi_reduction <add>, %103, %cst_44 [1, 2] : vector<1x2x8xf32> to vector<1xf32>
    %105 = vector.shape_cast %104 : vector<1xf32> to vector<1x1x1xf32>
    %106 = vector.extract %105[0, 0, 0] : f32 from vector<1x1x1xf32>
    %cst_45 = arith.constant 6.250000e-02 : f32
    %107 = arith.mulf %106, %cst_45 : f32
    %c0_46 = arith.constant 0 : index
    %c0_47 = arith.constant 0 : index
    %108 = vector.load %arg10[%c0_46, %c0_47] : memref<8x32xf32, #tpu.memory_space<vmem>>, vector<8x32xf32>
    %109 = vector.shape_cast %108 : vector<8x32xf32> to vector<1x8x32xf32>
    %c0_48 = arith.constant 0 : index
    %c0_49 = arith.constant 0 : index
    %110 = vector.load %arg11[%c0_48, %c0_49] : memref<1x8xf32, #tpu.memory_space<vmem>>, vector<1x8xf32>
    %c0_50 = arith.constant 0 : index
    %c0_51 = arith.constant 0 : index
    %c0_52 = arith.constant 0 : index
    %111 = vector.load %arg8[%c0_50, %c0_51, %c0_52] : memref<2x8x32xf32, #tpu.memory_space<vmem>>, vector<2x8x32xf32>
    %112 = vector.broadcast %109 : vector<1x8x32xf32> to vector<2x8x32xf32>
    %113 = arith.mulf %111, %112 : vector<2x8x32xf32>
    %cst_53 = arith.constant dense<0.000000e+00> : vector<2x8xf32>
    %114 = vector.multi_reduction <add>, %113, %cst_53 [2] : vector<2x8x32xf32> to vector<2x8xf32>
    %115 = vector.broadcast %110 : vector<1x8xf32> to vector<2x8xf32>
    %116 = arith.addf %114, %115 : vector<2x8xf32>
    %c0_54 = arith.constant 0 : index
    %c0_55 = arith.constant 0 : index
    %c0_56 = arith.constant 0 : index
    %117 = vector.load %arg9[%c0_54, %c0_55, %c0_56] : memref<2x8x32xf32, #tpu.memory_space<vmem>>, vector<2x8x32xf32>
    %118 = vector.broadcast %109 : vector<1x8x32xf32> to vector<2x8x32xf32>
    %119 = arith.mulf %117, %118 : vector<2x8x32xf32>
    %cst_57 = arith.constant dense<0.000000e+00> : vector<2x8xf32>
    %120 = vector.multi_reduction <add>, %119, %cst_57 [2] : vector<2x8x32xf32> to vector<2x8xf32>
    %121 = vector.broadcast %110 : vector<1x8xf32> to vector<2x8xf32>
    %122 = arith.addf %120, %121 : vector<2x8xf32>
    %123 = arith.negf %116 : vector<2x8xf32>
    %124 = math.exp %123 : vector<2x8xf32>
    %cst_58 = arith.constant 1.000000e+00 : f32
    %125 = vector.broadcast %cst_58 : f32 to vector<2x8xf32>
    %126 = arith.addf %125, %124 : vector<2x8xf32>
    %127 = arith.divf %125, %126 : vector<2x8xf32>
    %128 = math.log %127 : vector<2x8xf32>
    %cst_59 = arith.constant -1.000000e+02 : f32
    %129 = vector.broadcast %cst_59 : f32 to vector<2x8xf32>
    %130 = arith.maximumf %128, %129 : vector<2x8xf32>
    %cst_60 = arith.constant 1.000000e+00 : f32
    %131 = vector.broadcast %cst_60 : f32 to vector<2x8xf32>
    %132 = arith.subf %131, %127 : vector<2x8xf32>
    %133 = math.log %132 : vector<2x8xf32>
    %cst_61 = arith.constant -1.000000e+02 : f32
    %134 = vector.broadcast %cst_61 : f32 to vector<2x8xf32>
    %135 = arith.maximumf %133, %134 : vector<2x8xf32>
    %136 = arith.mulf %0, %130 : vector<2x8xf32>
    %cst_62 = arith.constant 1.000000e+00 : f32
    %137 = vector.broadcast %cst_62 : f32 to vector<2x8xf32>
    %138 = arith.subf %137, %0 : vector<2x8xf32>
    %139 = arith.mulf %138, %135 : vector<2x8xf32>
    %140 = arith.addf %136, %139 : vector<2x8xf32>
    %cst_63 = arith.constant 0.000000e+00 : f32
    %141 = vector.broadcast %cst_63 : f32 to vector<2x8xf32>
    %142 = arith.subf %141, %140 : vector<2x8xf32>
    %143 = arith.negf %122 : vector<2x8xf32>
    %144 = math.exp %143 : vector<2x8xf32>
    %cst_64 = arith.constant 1.000000e+00 : f32
    %145 = vector.broadcast %cst_64 : f32 to vector<2x8xf32>
    %146 = arith.addf %145, %144 : vector<2x8xf32>
    %147 = arith.divf %145, %146 : vector<2x8xf32>
    %148 = math.log %147 : vector<2x8xf32>
    %cst_65 = arith.constant -1.000000e+02 : f32
    %149 = vector.broadcast %cst_65 : f32 to vector<2x8xf32>
    %150 = arith.maximumf %148, %149 : vector<2x8xf32>
    %cst_66 = arith.constant 1.000000e+00 : f32
    %151 = vector.broadcast %cst_66 : f32 to vector<2x8xf32>
    %152 = arith.subf %151, %147 : vector<2x8xf32>
    %153 = math.log %152 : vector<2x8xf32>
    %cst_67 = arith.constant -1.000000e+02 : f32
    %154 = vector.broadcast %cst_67 : f32 to vector<2x8xf32>
    %155 = arith.maximumf %153, %154 : vector<2x8xf32>
    %156 = arith.mulf %1, %150 : vector<2x8xf32>
    %cst_68 = arith.constant 1.000000e+00 : f32
    %157 = vector.broadcast %cst_68 : f32 to vector<2x8xf32>
    %158 = arith.subf %157, %1 : vector<2x8xf32>
    %159 = arith.mulf %158, %155 : vector<2x8xf32>
    %160 = arith.addf %156, %159 : vector<2x8xf32>
    %cst_69 = arith.constant 0.000000e+00 : f32
    %161 = vector.broadcast %cst_69 : f32 to vector<2x8xf32>
    %162 = arith.subf %161, %160 : vector<2x8xf32>
    %163 = arith.addf %142, %162 : vector<2x8xf32>
    %164 = vector.shape_cast %163 : vector<2x8xf32> to vector<1x2x8xf32>
    %cst_70 = arith.constant dense<0.000000e+00> : vector<1xf32>
    %165 = vector.multi_reduction <add>, %164, %cst_70 [1, 2] : vector<1x2x8xf32> to vector<1xf32>
    %166 = vector.shape_cast %165 : vector<1xf32> to vector<1x1x1xf32>
    %167 = vector.extract %166[0, 0, 0] : f32 from vector<1x1x1xf32>
    %cst_71 = arith.constant 6.250000e-02 : f32
    %168 = arith.mulf %167, %cst_71 : f32
    %cst_72 = arith.constant 0.699999988 : f32
    %169 = arith.mulf %cst_72, %107 : f32
    %cst_73 = arith.constant 3.000000e-01 : f32
    %170 = arith.mulf %cst_73, %168 : f32
    %171 = arith.addf %169, %170 : f32
    %172 = math.roundeven %2 : vector<2x8xf32>
    %173 = math.roundeven %3 : vector<2x8xf32>
    %cst_74 = arith.constant 0.000000e+00 : f32
    %174 = vector.broadcast %cst_74 : f32 to vector<2x8xf32>
    %175 = arith.cmpf one, %172, %174 : vector<2x8xf32>
    %cst_75 = arith.constant 0.000000e+00 : f32
    %176 = vector.broadcast %cst_75 : f32 to vector<2x8xf32>
    %177 = arith.cmpf one, %173, %176 : vector<2x8xf32>
    %178 = arith.ori %175, %177 : vector<2x8xi1>
    %179 = arith.extui %178 : vector<2x8xi1> to vector<2x8xi32>
    %180 = arith.sitofp %179 : vector<2x8xi32> to vector<2x8xf32>
    %cst_76 = arith.constant 0.000000e+00 : f32
    %181 = vector.broadcast %cst_76 : f32 to vector<2x8xf32>
    %182 = arith.cmpf one, %0, %181 : vector<2x8xf32>
    %cst_77 = arith.constant 0.000000e+00 : f32
    %183 = vector.broadcast %cst_77 : f32 to vector<2x8xf32>
    %184 = arith.cmpf one, %1, %183 : vector<2x8xf32>
    %185 = arith.ori %182, %184 : vector<2x8xi1>
    %186 = arith.extui %185 : vector<2x8xi1> to vector<2x8xi32>
    %187 = arith.sitofp %186 : vector<2x8xi32> to vector<2x8xf32>
    %c0_78 = arith.constant 0 : index
    %188 = memref.load %arg12[%c0_78] : memref<4xf32, #tpu.memory_space<smem>>
    memref.store %171, %arg12[%c0_78] : memref<4xf32, #tpu.memory_space<smem>>
    %189 = arith.mulf %172, %0 : vector<2x8xf32>
    %190 = vector.shape_cast %189 : vector<2x8xf32> to vector<1x2x8xf32>
    %cst_79 = arith.constant dense<0.000000e+00> : vector<1xf32>
    %191 = vector.multi_reduction <add>, %190, %cst_79 [1, 2] : vector<1x2x8xf32> to vector<1xf32>
    %192 = vector.shape_cast %191 : vector<1xf32> to vector<1x1x1xf32>
    %193 = vector.extract %192[0, 0, 0] : f32 from vector<1x1x1xf32>
    %194 = vector.shape_cast %172 : vector<2x8xf32> to vector<1x2x8xf32>
    %cst_80 = arith.constant dense<0.000000e+00> : vector<1xf32>
    %195 = vector.multi_reduction <add>, %194, %cst_80 [1, 2] : vector<1x2x8xf32> to vector<1xf32>
    %196 = vector.shape_cast %195 : vector<1xf32> to vector<1x1x1xf32>
    %197 = vector.extract %196[0, 0, 0] : f32 from vector<1x1x1xf32>
    %198 = arith.divf %193, %197 : f32
    %199 = vector.shape_cast %0 : vector<2x8xf32> to vector<1x2x8xf32>
    %cst_81 = arith.constant dense<0.000000e+00> : vector<1xf32>
    %200 = vector.multi_reduction <add>, %199, %cst_81 [1, 2] : vector<1x2x8xf32> to vector<1xf32>
    %201 = vector.shape_cast %200 : vector<1xf32> to vector<1x1x1xf32>
    %202 = vector.extract %201[0, 0, 0] : f32 from vector<1x1x1xf32>
    %203 = arith.divf %193, %202 : f32
    %204 = arith.mulf %198, %203 : f32
    %cst_82 = arith.constant 2.000000e+00 : f32
    %205 = arith.mulf %cst_82, %204 : f32
    %206 = arith.addf %198, %203 : f32
    %cst_83 = arith.constant 9.99999974E-6 : f32
    %207 = arith.addf %206, %cst_83 : f32
    %208 = arith.divf %205, %207 : f32
    %c1 = arith.constant 1 : index
    %209 = memref.load %arg12[%c1] : memref<4xf32, #tpu.memory_space<smem>>
    memref.store %208, %arg12[%c1] : memref<4xf32, #tpu.memory_space<smem>>
    %210 = arith.mulf %173, %1 : vector<2x8xf32>
    %211 = vector.shape_cast %210 : vector<2x8xf32> to vector<1x2x8xf32>
    %cst_84 = arith.constant dense<0.000000e+00> : vector<1xf32>
    %212 = vector.multi_reduction <add>, %211, %cst_84 [1, 2] : vector<1x2x8xf32> to vector<1xf32>
    %213 = vector.shape_cast %212 : vector<1xf32> to vector<1x1x1xf32>
    %214 = vector.extract %213[0, 0, 0] : f32 from vector<1x1x1xf32>
    %215 = vector.shape_cast %173 : vector<2x8xf32> to vector<1x2x8xf32>
    %cst_85 = arith.constant dense<0.000000e+00> : vector<1xf32>
    %216 = vector.multi_reduction <add>, %215, %cst_85 [1, 2] : vector<1x2x8xf32> to vector<1xf32>
    %217 = vector.shape_cast %216 : vector<1xf32> to vector<1x1x1xf32>
    %218 = vector.extract %217[0, 0, 0] : f32 from vector<1x1x1xf32>
    %219 = arith.divf %214, %218 : f32
    %220 = vector.shape_cast %1 : vector<2x8xf32> to vector<1x2x8xf32>
    %cst_86 = arith.constant dense<0.000000e+00> : vector<1xf32>
    %221 = vector.multi_reduction <add>, %220, %cst_86 [1, 2] : vector<1x2x8xf32> to vector<1xf32>
    %222 = vector.shape_cast %221 : vector<1xf32> to vector<1x1x1xf32>
    %223 = vector.extract %222[0, 0, 0] : f32 from vector<1x1x1xf32>
    %224 = arith.divf %214, %223 : f32
    %225 = arith.mulf %219, %224 : f32
    %cst_87 = arith.constant 2.000000e+00 : f32
    %226 = arith.mulf %cst_87, %225 : f32
    %227 = arith.addf %219, %224 : f32
    %cst_88 = arith.constant 9.99999974E-6 : f32
    %228 = arith.addf %227, %cst_88 : f32
    %229 = arith.divf %226, %228 : f32
    %c2 = arith.constant 2 : index
    %230 = memref.load %arg12[%c2] : memref<4xf32, #tpu.memory_space<smem>>
    memref.store %229, %arg12[%c2] : memref<4xf32, #tpu.memory_space<smem>>
    %231 = arith.mulf %180, %187 : vector<2x8xf32>
    %232 = vector.shape_cast %231 : vector<2x8xf32> to vector<1x2x8xf32>
    %cst_89 = arith.constant dense<0.000000e+00> : vector<1xf32>
    %233 = vector.multi_reduction <add>, %232, %cst_89 [1, 2] : vector<1x2x8xf32> to vector<1xf32>
    %234 = vector.shape_cast %233 : vector<1xf32> to vector<1x1x1xf32>
    %235 = vector.extract %234[0, 0, 0] : f32 from vector<1x1x1xf32>
    %236 = vector.shape_cast %180 : vector<2x8xf32> to vector<1x2x8xf32>
    %cst_90 = arith.constant dense<0.000000e+00> : vector<1xf32>
    %237 = vector.multi_reduction <add>, %236, %cst_90 [1, 2] : vector<1x2x8xf32> to vector<1xf32>
    %238 = vector.shape_cast %237 : vector<1xf32> to vector<1x1x1xf32>
    %239 = vector.extract %238[0, 0, 0] : f32 from vector<1x1x1xf32>
    %240 = arith.divf %235, %239 : f32
    %241 = vector.shape_cast %187 : vector<2x8xf32> to vector<1x2x8xf32>
    %cst_91 = arith.constant dense<0.000000e+00> : vector<1xf32>
    %242 = vector.multi_reduction <add>, %241, %cst_91 [1, 2] : vector<1x2x8xf32> to vector<1xf32>
    %243 = vector.shape_cast %242 : vector<1xf32> to vector<1x1x1xf32>
    %244 = vector.extract %243[0, 0, 0] : f32 from vector<1x1x1xf32>
    %245 = arith.divf %235, %244 : f32
    %246 = arith.mulf %240, %245 : f32
    %cst_92 = arith.constant 2.000000e+00 : f32
    %247 = arith.mulf %cst_92, %246 : f32
    %248 = arith.addf %240, %245 : f32
    %cst_93 = arith.constant 9.99999974E-6 : f32
    %249 = arith.addf %248, %cst_93 : f32
    %250 = arith.divf %247, %249 : f32
    %c3 = arith.constant 3 : index
    %251 = memref.load %arg12[%c3] : memref<4xf32, #tpu.memory_space<smem>>
    memref.store %250, %arg12[%c3] : memref<4xf32, #tpu.memory_space<smem>>
    return
  }
}

</mosaic_0001>

<bundles_post_ra>
// kernel: tpu_custom_call.1
= control target key start
LH: loop header
LB: loop body
LE: loop exit
PB: predicated region body
PF: predicated region fallthrough
CT: control target
= control target key end

     0   :  { %17 = vsyncpa [#allocation3], 0  ;;  %s1195_s0 = inlined_call_operand.hbm [shape: f32[2,8], index: 0, kind: input, shape index: {}]   ;;  %s1196_s1 = inlined_call_operand.vmem [shape: f32[2,8], index: 1, kind: input, shape index: {}]   ;;  %s1197_s2 = inlined_call_operand.hbm [shape: f32[2,8], index: 2, kind: input, shape index: {}]   ;;  %s1198_s3 = inlined_call_operand.hbm [shape: f32[2,8], index: 3, kind: input, shape index: {}]   ;;  %s1199_s4 = inlined_call_operand.hbm [shape: f32[2,8], index: 4, kind: input, shape index: {}]   ;;  %s1200_s5 = inlined_call_operand.hbm [shape: f32[2,8], index: 5, kind: input, shape index: {}]   ;;  %s1201_s6 = inlined_call_operand.hbm [shape: f32[2,8], index: 6, kind: input, shape index: {}]   ;;  %s1202_s7 = inlined_call_operand.hbm [shape: f32[2,8], index: 7, kind: input, shape index: {}]   ;;  %s1203_s8 = inlined_call_operand.vmem [shape: f32[2,8,32], index: 8, kind: input, shape index: {}]   ;;  %s1204_s9 = inlined_call_operand.vmem [shape: f32[2,8,32], index: 9, kind: input, shape index: {}]   ;;  %s1205_s10 = inlined_call_operand.hbm [shape: f32[8,32], index: 10, kind: input, shape index: {}]   ;;  %s1206_s11 = inlined_call_operand.vmem [shape: f32[1,8], index: 11, kind: input, shape index: {}]   ;;  %s1207_s12 = inlined_call_operand.hbm [shape: f32[4], index: 12, kind: output, shape index: {}]  }
   0x1   :  { %18 = vsyncpa [#allocation6], 0 }
   0x2   :  { %19 = vsyncpa [#allocation9], 0 }
   0x3   :  { %20 = vsyncpa [#allocation12], 0 }
   0x4   :  { %21 = vsyncpa [#allocation15], 0 }
   0x5   :  { %22 = vsyncpa [#allocation4], 0  ;;  %s927_s21 = smov [#allocation5]   ;;  %s928_s23 = smov [#allocation8]  }
   0x6   :  { %s41_s22 = sshll.u32 %s927_s21, 4  ;;  %s61_s24 = sshll.u32 %s928_s23, 4  ;;  %s42_s22 = int_to_ptr.vmem [resolvable:$true] %s41_s22  ;;  %s62_s24 = int_to_ptr.vmem [resolvable:$true] %s61_s24 }
   0x7   :  { %s729_s27 = scalar_lea.hbm %s1197_s2, 32 }
   0x8   :  { %p730_p0 = scmp.ne.s32.totalorder %s1197_s2, %s729_s27  ;;  %p733_p1 = scmp.lt.u32.totalorder %s729_s27, %s1197_s2 }
   0xa   :  { %p735_p2 = pnand %p733_p1, %p730_p0 }
   0xc   :  { %738 = shalt.err (!%p735_p2)
}
   0xd   :  { %s739_s14 = scalar_lea.vmem %s42_s22, 32  ;;  %p744_p4 = scmp.lt.s32.totalorder %s42_s22, %s42_s22 }
   0xe   :  { %p740_p3 = scmp.ne.s32.totalorder %s42_s22, %s739_s14  ;;  %p745_p5 = scmp.lt.s32.totalorder %s739_s14, %s739_s14 }
  0x10   :  { %p746_p6 = por %p745_p5, %p744_p4 }
  0x12   :  { %p747_p7 = pnand %p746_p6, %p740_p3 }
  0x14   :  { %750 = shalt.err (!%p747_p7)
}
  0x15   :  { %44 = dma.hbm_to_vmem [thread:$0]  %s1197_s2, 32, %s42_s22, [#allocation6]  }
  0x16   :  { %s751_s19 = scalar_lea.hbm %s1199_s4, 32 }
  0x17   :  { %p752_p8 = scmp.ne.s32.totalorder %s1199_s4, %s751_s19  ;;  %p755_p9 = scmp.lt.u32.totalorder %s751_s19, %s1199_s4 }
  0x19   :  { %p757_p10 = pnand %p755_p9, %p752_p8 }
  0x1b   :  { %760 = shalt.err (!%p757_p10)
}
  0x1c   :  { %s761_s26 = scalar_lea.vmem %s62_s24, 32  ;;  %p766_p12 = scmp.lt.s32.totalorder %s62_s24, %s62_s24 }
  0x1d   :  { %p762_p11 = scmp.ne.s32.totalorder %s62_s24, %s761_s26  ;;  %p767_p13 = scmp.lt.s32.totalorder %s761_s26, %s761_s26 }
  0x1f   :  { %p768_p0 = por %p767_p13, %p766_p12 }
  0x21   :  { %p769_p1 = pnand %p768_p0, %p762_p11 }
  0x23   :  { %772 = shalt.err (!%p769_p1)
}
  0x24   :  { %64 = dma.hbm_to_vmem [thread:$0]  %s1199_s4, 32, %s62_s24, [#allocation9]  }
  0x25   :  { %s929_s27 = smov [#allocation11]   ;;  %s930_s29 = smov [#allocation2]  }
  0x26   :  { %s81_s28 = sshll.u32 %s929_s27, 4  ;;  %s29_s30 = sshll.u32 %s930_s29, 4  ;;  %s82_s28 = int_to_ptr.vmem [resolvable:$true] %s81_s28  ;;  %s30_s30 = int_to_ptr.vmem [resolvable:$true] %s29_s30 }
  0x27   :  { %s773_s15 = scalar_lea.hbm %s1201_s6, 32 }
  0x28   :  { %p774_p2 = scmp.ne.s32.totalorder %s1201_s6, %s773_s15  ;;  %p777_p3 = scmp.lt.u32.totalorder %s773_s15, %s1201_s6 }
  0x2a   :  { %p779_p4 = pnand %p777_p3, %p774_p2 }
  0x2c   :  { %782 = shalt.err (!%p779_p4)
}
  0x2d   :  { %s783_s4 = scalar_lea.vmem %s82_s28, 32  ;;  %p788_p6 = scmp.lt.s32.totalorder %s82_s28, %s82_s28 }
  0x2e   :  { %p784_p5 = scmp.ne.s32.totalorder %s82_s28, %s783_s4  ;;  %p789_p7 = scmp.lt.s32.totalorder %s783_s4, %s783_s4 }
  0x30   :  { %p790_p8 = por %p789_p7, %p788_p6 }
  0x32   :  { %p791_p9 = pnand %p790_p8, %p784_p5 }
  0x34   :  { %794 = shalt.err (!%p791_p9)
}
  0x35   :  { %84 = dma.hbm_to_vmem [thread:$0]  %s1201_s6, 32, %s82_s28, [#allocation12]  }
  0x36   :  { %s795_s25 = scalar_lea.hbm %s1195_s0, 32 }
  0x37   :  { %p796_p10 = scmp.ne.s32.totalorder %s1195_s0, %s795_s25  ;;  %p799_p11 = scmp.lt.u32.totalorder %s795_s25, %s1195_s0 }
  0x39   :  { %p801_p12 = pnand %p799_p11, %p796_p10 }
  0x3b   :  { %804 = shalt.err (!%p801_p12)
}
  0x3c   :  { %s805_s29 = scalar_lea.vmem %s30_s30, 32  ;;  %p810_p0 = scmp.lt.s32.totalorder %s30_s30, %s30_s30 }
  0x3d   :  { %p806_p13 = scmp.ne.s32.totalorder %s30_s30, %s805_s29  ;;  %p811_p1 = scmp.lt.s32.totalorder %s805_s29, %s805_s29 }
  0x3f   :  { %p812_p2 = por %p811_p1, %p810_p0 }
  0x41   :  { %p813_p3 = pnand %p812_p2, %p806_p13 }
  0x43   :  { %816 = shalt.err (!%p813_p3)
}
  0x44   :  { %32 = dma.hbm_to_vmem [thread:$0]  %s1195_s0, 32, %s30_s30, [#allocation3]  }
  0x45   :  { %s931_s13 = smov [#allocation7]   ;;  %s932_s15 = smov [#allocation10]  }
  0x46   :  { %s51_s14 = sshll.u32 %s931_s13, 4  ;;  %s71_s16 = sshll.u32 %s932_s15, 4  ;;  %s52_s14 = int_to_ptr.vmem [resolvable:$true] %s51_s14  ;;  %s72_s16 = int_to_ptr.vmem [resolvable:$true] %s71_s16 }
  0x47   :  { %s817_s19 = scalar_lea.hbm %s1198_s3, 32 }
  0x48   :  { %p818_p4 = scmp.ne.s32.totalorder %s1198_s3, %s817_s19  ;;  %p821_p5 = scmp.lt.u32.totalorder %s817_s19, %s1198_s3 }
  0x4a   :  { %p823_p6 = pnand %p821_p5, %p818_p4 }
  0x4c   :  { %826 = shalt.err (!%p823_p6)
}
  0x4d   :  { %s827_s0 = scalar_lea.vmem %s52_s14, 32  ;;  %p832_p8 = scmp.lt.s32.totalorder %s52_s14, %s52_s14 }
  0x4e   :  { %p828_p7 = scmp.ne.s32.totalorder %s52_s14, %s827_s0  ;;  %p833_p9 = scmp.lt.s32.totalorder %s827_s0, %s827_s0 }
  0x50   :  { %p834_p10 = por %p833_p9, %p832_p8 }
  0x52   :  { %p835_p11 = pnand %p834_p10, %p828_p7 }
  0x54   :  { %838 = shalt.err (!%p835_p11)
}
  0x55   :  { %54 = dma.hbm_to_vmem [thread:$0]  %s1198_s3, 32, %s52_s14, [#allocation6]  }
  0x56   :  { %s839_s2 = scalar_lea.hbm %s1200_s5, 32 }
  0x57   :  { %p840_p12 = scmp.ne.s32.totalorder %s1200_s5, %s839_s2  ;;  %p843_p13 = scmp.lt.u32.totalorder %s839_s2, %s1200_s5 }
  0x59   :  { %p845_p0 = pnand %p843_p13, %p840_p12 }
  0x5b   :  { %848 = shalt.err (!%p845_p0)
}
  0x5c   :  { %s849_s28 = scalar_lea.vmem %s72_s16, 32  ;;  %p854_p2 = scmp.lt.s32.totalorder %s72_s16, %s72_s16 }
  0x5d   :  { %p850_p1 = scmp.ne.s32.totalorder %s72_s16, %s849_s28  ;;  %p855_p3 = scmp.lt.s32.totalorder %s849_s28, %s849_s28 }
  0x5f   :  { %p856_p4 = por %p855_p3, %p854_p2 }
  0x61   :  { %p857_p5 = pnand %p856_p4, %p850_p1 }
  0x63   :  { %860 = shalt.err (!%p857_p5)
}
  0x64   :  { %74 = dma.hbm_to_vmem [thread:$0]  %s1200_s5, 32, %s72_s16, [#allocation9]  }
  0x65   :  { %s933_s14 = smov [#allocation13]   ;;  %s934_s17 = smov [#allocation14]  }
  0x66   :  { %s91_s15 = sshll.u32 %s933_s14, 4  ;;  %s105_s18 = sshll.u32 %s934_s17, 4  ;;  %s92_s15 = int_to_ptr.vmem [resolvable:$true] %s91_s15  ;;  %s106_s18 = int_to_ptr.vmem [resolvable:$true] %s105_s18 }
  0x67   :  { %s861_s24 = scalar_lea.hbm %s1202_s7, 32 }
  0x68   :  { %p862_p6 = scmp.ne.s32.totalorder %s1202_s7, %s861_s24  ;;  %p865_p7 = scmp.lt.u32.totalorder %s861_s24, %s1202_s7 }
  0x6a   :  { %p867_p8 = pnand %p865_p7, %p862_p6 }
  0x6c   :  { %870 = shalt.err (!%p867_p8)
}
  0x6d   :  { %s871_s5 = scalar_lea.vmem %s92_s15, 32  ;;  %p876_p10 = scmp.lt.s32.totalorder %s92_s15, %s92_s15 }
  0x6e   :  { %p872_p9 = scmp.ne.s32.totalorder %s92_s15, %s871_s5  ;;  %p877_p11 = scmp.lt.s32.totalorder %s871_s5, %s871_s5 }
  0x70   :  { %p878_p12 = por %p877_p11, %p876_p10 }
  0x72   :  { %p879_p13 = pnand %p878_p12, %p872_p9 }
  0x74   :  { %882 = shalt.err (!%p879_p13)
}
  0x75   :  { %94 = dma.hbm_to_vmem [thread:$0]  %s1202_s7, 32, %s92_s15, [#allocation12]  }
  0x76   :  { %s883_s2 = scalar_lea.hbm %s1205_s10, 128 }
  0x77   :  { %p884_p0 = scmp.ne.s32.totalorder %s1205_s10, %s883_s2  ;;  %p887_p1 = scmp.lt.u32.totalorder %s883_s2, %s1205_s10 }
  0x79   :  { %p889_p2 = pnand %p887_p1, %p884_p0 }
  0x7b   :  { %892 = shalt.err (!%p889_p2)
}
  0x7c   :  { %s893_s28 = scalar_lea.vmem %s106_s18, 128  ;;  %p898_p4 = scmp.lt.s32.totalorder %s106_s18, %s106_s18 }
  0x7d   :  { %p894_p3 = scmp.ne.s32.totalorder %s106_s18, %s893_s28  ;;  %p899_p5 = scmp.lt.s32.totalorder %s893_s28, %s893_s28 }
  0x7f   :  { %p900_p6 = por %p899_p5, %p898_p4 }
  0x81   :  { %p901_p7 = pnand %p900_p6, %p894_p3 }
  0x83   :  { %904 = shalt.err (!%p901_p7)
}
  0x84   :  { %108 = dma.hbm_to_vmem [thread:$0]  %s1205_s10, 128, %s106_s18, [#allocation15]  }
  0x85   :  { %915 = dma.done.wait [#allocation3], 32  }
  0x86   :  { %916 = vsyncadd [#allocation3], 4294967264 }
  0x87   :  { %917 = dma.done.wait [#allocation6], 64  }
  0x88   :  { %918 = vsyncadd [#allocation6], 4294967232 }
  0x89   :  { %919 = dma.done.wait [#allocation9], 64  }
  0x8a   :  { %920 = vsyncadd [#allocation9], 4294967232 }
  0x8b   :  { %921 = dma.done.wait [#allocation12], 64  }
  0x8c   :  { %922 = vsyncadd [#allocation12], 4294967232 }
  0x8d   :  { %923 = dma.done.wait [#allocation15], 128  }
  0x8e   :  { %924 = vsyncadd [#allocation15], 4294967168  ;;  %v228_v0 = vld [vmem:[#allocation14] sm:$0xff]  ;;  %v230_v1 = vld [vmem:[%s1203_s8] sm:$0xff]  ;;  %vm234_vm0 = vcmask 261120   ;;  %v935_v14 = vmov 0  }
  0x8f   :  { %v252_v2 = vld [vmem:[%s1204_s9] sm:$0xff]  ;;  %v232_v3 = vmul.f32 %v230_v1, %v228_v0  ;;  %v231_v5 = vld [vmem:[%s1203_s8 + $0x8] sm:$0xff]  ;;  %653 = vset.pattern.permute.xlu1 %v935_v14  ;;  %654 = vset.pattern.permute.xlu0 %v935_v14  ;;  %vm216_vm1 = vcmask 58368   ;;  %vm308_vm2 = vcmask 1041409  }
  0x90   :  { %v254_v4 = vmul.f32 %v252_v2, %v228_v0  ;;  %v253_v6 = vld [vmem:[%s1204_s9 + $0x8] sm:$0xff]  ;;  %v233_v7 = vmul.f32 %v231_v5, %v228_v0  ;;  %v593_v13 = vld [vmem:[%s1206_s11] ss:$0 sm:$0xff]  ;;  %v164_v48 = vld [vmem:[#allocation5] sm:$0x3] }
  0x91   :  { %v255_v8 = vmul.f32 %v253_v6, %v228_v0  ;;  %v235_v9 = vsel %vm234_vm0, %v232_v3, 0.0  ;;  %v1117_v44 = vld [vmem:[%s1196_s1] sm:$0x3]  ;;  %v177_v50 = vld [vmem:[#allocation7] sm:$0x3]  ;;  %v168_v53 = vsub.f32 1.0, %v164_v48 }
  0x92   :  { %v256_v10 = vsel %vm234_vm0, %v254_v4, 0.0  ;;  %236 = vadd.xlane.f32.xlu0 %v235_v9  ;;  %v238_v11 = vsel %vm234_vm0, %v233_v7, 0.0  ;;  %v139_v45 = vld [vmem:[#allocation2] sm:$0x3]  ;;  %v155_v47 = vsub.f32 1.0, %v1117_v44  ;;  %v181_v59 = vsub.f32 1.0, %v177_v50 }
  0x93   :  { %257 = vadd.xlane.f32.xlu1 %v256_v10  ;;  %v259_v12 = vsel %vm234_vm0, %v255_v8, 0.0  ;;  %v143_v46 = vsub.f32 1.0, %v139_v45  ;;  %v1120_v55 = vld [vmem:[#allocation8] sm:$0x3]  ;;  %v202_v62 = vld [vmem:[#allocation10] sm:$0x3] }
  0x94   :  { %v193_v63 = vsub.f32 1.0, %v1120_v55  ;;  %v206_v5 = vsub.f32 1.0, %v202_v62  ;;  %v1125_v10 = vld [vmem:[#allocation11] sm:$0x3] }
  0x95   :  { %vm421_vm5 = vcmp.ne.f32.partialorder %v1125_v10, 0.0 }
  0x96   :  { %239 = vadd.xlane.f32.xlu0 %v238_v11 }
  0x97   :  { %260 = vadd.xlane.f32.xlu1 %v259_v12 }
  0xac   :  { %247 = vbcast.lane.b32.xlu0 %v593_v13, 256 }
 0x11f   :  { %v237_v15 = vpop.xlane.xlu0 %236 }
 0x120   :  { %v258_v16 = vpop.xlane.xlu1 %257 }
 0x123   :  { %v240_v17 = vpop.xlane.xlu0 %239 }
 0x124   :  { %v261_v18 = vpop.xlane.xlu1 %260 }
 0x127   :  { %v248_v19 = vpop.permute.xlu0 %247 }
 0x128   :  { %v250_v20 = vadd.f32 %v248_v19, %v237_v15  ;;  %v251_v21 = vadd.f32 %v248_v19, %v240_v17  ;;  %v262_v22 = vadd.f32 %v258_v16, %v248_v19  ;;  %v263_v23 = vadd.f32 %v261_v18, %v248_v19 }
 0x129   :  { %v1128_v18 = vsub.f32 1.0, %v1125_v10 }
 0x12a   :  { %v594_v24 = vmul.f32 -1.442695, %v250_v20  ;;  %v595_v25 = vmul.f32 -1.442695, %v251_v21  ;;  %v596_v26 = vmul.f32 -1.442695, %v262_v22 }
 0x12b   :  { %v597_v27 = vmul.f32 -1.442695, %v263_v23 }
 0x12c   :  { %655 = vpow2.f32 %v594_v24 }
 0x12d   :  { %657 = vpow2.f32 %v595_v25 }
 0x12e   :  { %659 = vpow2.f32 %v596_v26 }
 0x12f   :  { %661 = vpow2.f32 %v597_v27  ;;  %v1130_v27 = vld [vmem:[#allocation13] sm:$0x3] }
 0x130   :  { %vm422_vm7 = vcmp.ne.f32.partialorder %v1130_v27, 0.0 }
 0x131   :  { %vm423_vm8 = vmor %vm421_vm5, %vm422_vm7 }
 0x136   :  { %v656_v28 = vpop.eup %655 }
 0x137   :  { %v658_v29 = vpop.eup %657  ;;  %v270_v30 = vadd.f32 1.0, %v656_v28 }
 0x138   :  { %v660_v31 = vpop.eup %659  ;;  %v271_v32 = vadd.f32 1.0, %v658_v29 }
 0x139   :  { %v662_v33 = vpop.eup %661  ;;  %663 = vrcp.f32 %v270_v30  ;;  %v339_v34 = vadd.f32 1.0, %v660_v31 }
 0x13a   :  { %665 = vrcp.f32 %v271_v32  ;;  %v340_v35 = vadd.f32 1.0, %v662_v33 }
 0x13b   :  { %667 = vrcp.f32 %v339_v34 }
 0x13c   :  { %669 = vrcp.f32 %v340_v35 }
 0x143   :  { %v664_v36 = vpop.eup %663 }
 0x144   :  { %v666_v37 = vpop.eup %665  ;;  %671 = vlog2.f32 %v664_v36  ;;  %v282_v42 = vsub.f32 1.0, %v664_v36 }
 0x145   :  { %v668_v38 = vpop.eup %667  ;;  %v283_v39 = vsub.f32 1.0, %v666_v37  ;;  %673 = vlog2.f32 %v666_v37 }
 0x146   :  { %v670_v40 = vpop.eup %669  ;;  %v351_v41 = vsub.f32 1.0, %v668_v38  ;;  %675 = vlog2.f32 %v668_v38 }
 0x147   :  { %677 = vlog2.f32 %v283_v39  ;;  %v352_v43 = vsub.f32 1.0, %v670_v40 }
 0x148   :  { %679 = vlog2.f32 %v351_v41 }
 0x149   :  { %681 = vlog2.f32 %v670_v40 }
 0x14a   :  { %683 = vlog2.f32 %v282_v42 }
 0x14b   :  { %685 = vlog2.f32 %v352_v43 }
 0x14c   :  { %687 = vlog2.f32 %v139_v45  ;;  %v1137_v45 = vsub.f32 1.0, %v1130_v27 }
 0x14d   :  { %689 = vlog2.f32 %v143_v46 }
 0x14e   :  { %v672_v49 = vpop.eup %671  ;;  %691 = vlog2.f32 %v1117_v44 }
 0x14f   :  { %v674_v51 = vpop.eup %673  ;;  %v277_v52 = vmul.f32 0.6931472, %v672_v49  ;;  %693 = vlog2.f32 %v155_v47 }
 0x150   :  { %v676_v54 = vpop.eup %675  ;;  %v279_v58 = vmul.f32 0.6931472, %v674_v51  ;;  %695 = vlog2.f32 %v164_v48 }
 0x151   :  { %v678_v56 = vpop.eup %677  ;;  %v280_v57 = vmax.f32 %v277_v52, -100.0  ;;  %697 = vlog2.f32 %v168_v53  ;;  %v346_v4 = vmul.f32 0.6931472, %v676_v54 }
 0x152   :  { %v680_v60 = vpop.eup %679  ;;  %v287_v61 = vmul.f32 0.6931472, %v678_v56  ;;  %699 = vlog2.f32 %v177_v50  ;;  %v281_v3 = vmax.f32 %v279_v58, -100.0 }
 0x153   :  { %293 = vperm.xlu1 %653, %v280_v57   ;;  %v354_v1 = vmul.f32 0.6931472, %v680_v60  ;;  %v682_v2 = vpop.eup %681  ;;  %701 = vlog2.f32 %v181_v59  ;;  %v349_v12 = vmax.f32 %v346_v4, -100.0 }
 0x154   :  { %v289_v0 = vmax.f32 %v287_v61, -100.0  ;;  %v684_v6 = vpop.eup %683  ;;  %703 = vlog2.f32 %v1120_v55  ;;  %v348_v13 = vmul.f32 0.6931472, %v682_v2 }
 0x155   :  { %v686_v7 = vpop.eup %685  ;;  %705 = vlog2.f32 %v193_v63  ;;  %v357_v9 = vmax.f32 %v354_v1, -100.0  ;;  %v285_v22 = vmul.f32 0.6931472, %v684_v6 }
 0x156   :  { %318 = vperm.xlu0 %654, %v289_v0   ;;  %v688_v8 = vpop.eup %687  ;;  %707 = vlog2.f32 %v202_v62  ;;  %v350_v26 = vmax.f32 %v348_v13, -100.0  ;;  %v356_v36 = vmul.f32 0.6931472, %v686_v7 }
 0x157   :  { %296 = vperm.xlu1 %653, %v281_v3   ;;  %v690_v11 = vpop.eup %689  ;;  %v141_v14 = vmul.f32 0.6931472, %v688_v8  ;;  %709 = vlog2.f32 %v206_v5  ;;  %v288_v47 = vmax.f32 %v285_v22, -100.0 }
 0x158   :  { %v692_v15 = vpop.eup %691  ;;  %v145_v16 = vmul.f32 0.6931472, %v690_v11  ;;  %v358_v62 = vmax.f32 %v356_v36, -100.0 }
 0x159   :  { %v694_v17 = vpop.eup %693  ;;  %v142_v19 = vmax.f32 %v141_v14, -100.0  ;;  %v153_v20 = vmul.f32 0.6931472, %v692_v15 }
 0x15a   :  { %381 = vperm.xlu0 %654, %v357_v9   ;;  %v696_v21 = vpop.eup %695  ;;  %v146_v23 = vmax.f32 %v145_v16, -100.0  ;;  %v157_v24 = vmul.f32 0.6931472, %v694_v17 }
 0x15b   :  { %362 = vperm.xlu1 %653, %v349_v12   ;;  %v698_v25 = vpop.eup %697  ;;  %v147_v28 = vmul.f32 %v142_v19, %v1125_v10  ;;  %v154_v29 = vmax.f32 %v153_v20, -100.0  ;;  %v166_v30 = vmul.f32 0.6931472, %v696_v21 }
 0x15c   :  { %v700_v31 = vpop.eup %699  ;;  %v149_v32 = vmul.f32 %v1128_v18, %v146_v23  ;;  %v158_v33 = vmax.f32 %v157_v24, -100.0  ;;  %v170_v34 = vmul.f32 0.6931472, %v698_v25  ;;  %v1148_v25 = vround.rtne.f32 %v1117_v44 }
 0x15d   :  { %v702_v35 = vpop.eup %701  ;;  %v159_v37 = vmul.f32 %v154_v29, %v1125_v10  ;;  %v167_v38 = vmax.f32 %v166_v30, -100.0  ;;  %v179_v39 = vmul.f32 0.6931472, %v700_v31  ;;  %v453_v31 = vsel %vm216_vm1, %v1125_v10, 0.0 }
 0x15e   :  { %v704_v40 = vpop.eup %703  ;;  %v160_v41 = vmul.f32 %v158_v33, %v1128_v18  ;;  %v171_v42 = vmax.f32 %v170_v34, -100.0  ;;  %v183_v43 = vmul.f32 0.6931472, %v702_v35  ;;  %v150_v48 = vadd.f32 %v149_v32, %v147_v28 }
 0x15f   :  { %365 = vperm.xlu1 %653, %v350_v26   ;;  %v706_v46 = vpop.eup %705  ;;  %v180_v49 = vmax.f32 %v179_v39, -100.0  ;;  %v191_v50 = vmul.f32 0.6931472, %v704_v40  ;;  %v172_v53 = vmul.f32 %v167_v38, %v1125_v10  ;;  %v428_v28 = vmul.f32 %v1148_v25, %v1125_v10 }
 0x160   :  { %v708_v51 = vpop.eup %707  ;;  %v161_v52 = vadd.f32 %v160_v41, %v159_v37  ;;  %v173_v54 = vmul.f32 %v171_v42, %v1128_v18  ;;  %v184_v56 = vmax.f32 %v183_v43, -100.0  ;;  %v195_v60 = vmul.f32 0.6931472, %v706_v46 }
 0x161   :  { %v710_v57 = vpop.eup %709  ;;  %v185_v58 = vmul.f32 %v180_v49, %v1130_v27  ;;  %v192_v59 = vmax.f32 %v191_v50, -100.0  ;;  %v204_v61 = vmul.f32 0.6931472, %v708_v51  ;;  %v151_v1 = vsub.f32 0.0, %v150_v48 }
 0x162   :  { %v187_v63 = vmul.f32 %v1137_v45, %v184_v56  ;;  %v208_v0 = vmul.f32 0.6931472, %v710_v57  ;;  %v196_v2 = vmax.f32 %v195_v60, -100.0  ;;  %v162_v5 = vsub.f32 0.0, %v161_v52 }
 0x163   :  { %315 = vperm.xlu1 %653, %v288_v47   ;;  %v197_v3 = vmul.f32 %v192_v59, %v1130_v27  ;;  %v205_v4 = vmax.f32 %v204_v61, -100.0  ;;  %v174_v6 = vadd.f32 %v173_v54, %v172_v53  ;;  %v429_v29 = vsel %vm216_vm1, %v428_v28, 0.0 }
 0x164   :  { %v188_v7 = vadd.f32 %v187_v63, %v185_v58  ;;  %v209_v8 = vmax.f32 %v208_v0, -100.0  ;;  %v198_v9 = vmul.f32 %v196_v2, %v1137_v45  ;;  %v163_v15 = vadd.f32 %v162_v5, %v151_v1 }
 0x165   :  { %v210_v11 = vmul.f32 %v205_v4, %v1130_v27  ;;  %v175_v16 = vsub.f32 0.0, %v174_v6  ;;  %v439_v30 = vsel %vm216_vm1, %v1148_v25, 0.0  ;;  %v298_v33 = vlaneseq }
 0x166   :  { %v211_v12 = vmul.f32 %v209_v8, %v1137_v45  ;;  %v189_v13 = vsub.f32 0.0, %v188_v7  ;;  %v199_v14 = vadd.f32 %v198_v9, %v197_v3  ;;  %v605_v9 = vround.rtne.f32 %v1120_v55 }
 0x167   :  { %384 = vperm.xlu1 %653, %v358_v62   ;;  %v176_v22 = vadd.f32 %v175_v16, %v163_v15  ;;  %v299_v35 = vand.u32 127, %v298_v33  ;;  %v301_v36 = vshrl.u32 %v298_v33, 7  ;;  %vm416_vm3 = vcmp.ne.f32.partialorder %v1148_v25, 0.0 }
 0x168   :  { %v212_v17 = vadd.f32 %v211_v12, %v210_v11  ;;  %v200_v19 = vsub.f32 0.0, %v199_v14  ;;  %v477_v12 = vmul.f32 %v605_v9, %v1130_v27  ;;  %v502_v14 = vsel %vm216_vm1, %v1130_v27, 0.0 }
 0x169   :  { %v302_v39 = vsub.s32 %v299_v35, %v301_v36  ;;  %vm417_vm4 = vcmp.ne.f32.partialorder %v605_v9, 0.0 }
 0x16a   :  { %v213_v20 = vsub.f32 0.0, %v212_v17  ;;  %v201_v21 = vadd.f32 %v200_v19, %v189_v13  ;;  %v478_v13 = vsel %vm216_vm1, %v477_v12, 0.0  ;;  %vm418_vm6 = vmor %vm416_vm3, %vm417_vm4 }
 0x16c   :  { %v214_v23 = vadd.f32 %v213_v20, %v201_v21 }
 0x16e   :  { %v215_v24 = vadd.f32 %v214_v23, %v176_v22 }
 0x170   :  { %v217_v26 = vsel %vm216_vm1, %v215_v24, 0.0 }
 0x179   :  { %218 = vadd.xlane.f32.xlu0 %v217_v26 }
 0x17d   :  { %430 = vadd.xlane.f32.xlu0 %v429_v29 }
 0x181   :  { %440 = vadd.xlane.f32.xlu0 %v439_v30 }
 0x185   :  { %454 = vadd.xlane.f32.xlu0 %v453_v31 }
 0x1d2   :  { %v294_v44 = vpop.permute.xlu1 %293 }
 0x1d3   :  { %v303_v42 = vrot.slane %v294_v44, %v302_v39 }
 0x1d5   :  { %v319_v37 = vpop.permute.xlu0 %318 }
 0x1d6   :  { %v297_v32 = vpop.permute.xlu1 %296  ;;  %v327_v43 = vrot.slane %v319_v37, %v302_v39 }
 0x1d7   :  { %v307_v40 = vrot.slane %v297_v32, %v302_v39 }
 0x1d9   :  { %v382_v48 = vpop.permute.xlu0 %381  ;;  %v309_v49 = vsel %vm308_vm2, %v307_v40, %v303_v42 }
 0x1da   :  { %v363_v34 = vpop.permute.xlu1 %362  ;;  %v389_v54 = vrot.slane %v382_v48, %v302_v39  ;;  %v311_v58 = vmul.f32 %v309_v49, %v1125_v10  ;;  %v936_v48 = vmov 0.0  }
 0x1db   :  { %v370_v50 = vrot.slane %v363_v34, %v302_v39  ;;  %v598_v49 = vsel %vm418_vm6, 1.0, %v936_v48 }
 0x1de   :  { %v366_v38 = vpop.permute.xlu1 %365 }
 0x1df   :  { %v374_v46 = vrot.slane %v366_v38, %v302_v39 }
 0x1e1   :  { %v375_v56 = vsel %vm308_vm2, %v374_v46, %v370_v50  ;;  %v537_v50 = vsel %vm216_vm1, %v598_v49, 0.0 }
 0x1e2   :  { %v316_v41 = vpop.permute.xlu1 %315  ;;  %v377_v60 = vmul.f32 %v375_v56, %v1130_v27 }
 0x1e3   :  { %v323_v47 = vrot.slane %v316_v41, %v302_v39 }
 0x1e5   :  { %v328_v51 = vsel %vm308_vm2, %v327_v43, %v323_v47 }
 0x1e6   :  { %v330_v52 = vmul.f32 %v328_v51, %v1128_v18  ;;  %v385_v53 = vpop.permute.xlu1 %384  ;;  %v599_v51 = vsel %vm423_vm8, 1.0, %v936_v48 }
 0x1e7   :  { %v393_v57 = vrot.slane %v385_v53, %v302_v39  ;;  %v551_v27 = vsel %vm216_vm1, %v599_v51, 0.0 }
 0x1e8   :  { %v331_v62 = vadd.f32 %v330_v52, %v311_v58  ;;  %v526_v52 = vmul.f32 %v599_v51, %v598_v49 }
 0x1e9   :  { %v394_v59 = vsel %vm308_vm2, %v393_v57, %v389_v54 }
 0x1ea   :  { %v396_v61 = vmul.f32 %v394_v59, %v1137_v45  ;;  %v332_v0 = vsub.f32 0.0, %v331_v62  ;;  %v488_v45 = vsel %vm216_vm1, %v605_v9, 0.0  ;;  %v527_v53 = vsel %vm216_vm1, %v526_v52, 0.0 }
 0x1eb   :  { %489 = vadd.xlane.f32.xlu0 %v488_v45 }
 0x1ec   :  { %v397_v63 = vadd.f32 %v396_v61, %v377_v60 }
 0x1ee   :  { %v398_v1 = vsub.f32 0.0, %v397_v63 }
 0x1ef   :  { %528 = vadd.xlane.f32.xlu0 %v527_v53 }
 0x1f0   :  { %v399_v2 = vadd.f32 %v398_v1, %v332_v0 }
 0x1f2   :  { %v400_v18 = vsel %vm216_vm1, %v399_v2, 0.0 }
 0x1f3   :  { %401 = vadd.xlane.f32.xlu1 %v400_v18  ;;  %552 = vadd.xlane.f32.xlu0 %v551_v27 }
 0x1f7   :  { %479 = vadd.xlane.f32.xlu1 %v478_v13 }
 0x1fb   :  { %503 = vadd.xlane.f32.xlu1 %v502_v14 }
 0x1ff   :  { %538 = vadd.xlane.f32.xlu1 %v537_v50 }
 0x206   :  { %v219_v3 = vpop.xlane.xlu0 %218 }
 0x207   :  { %v220_v4 = vrot.slane %v219_v3, 4 }
 0x209   :  { %v221_v5 = vadd.f32 %v220_v4, %v219_v3 }
 0x20a   :  { %v431_v15 = vpop.xlane.xlu0 %430 }
 0x20b   :  { %v222_v6 = vrot.slane %v221_v5, 2  ;;  %v432_v17 = vrot.slane %v431_v15, 4 }
 0x20d   :  { %v223_v7 = vadd.f32 %v222_v6, %v221_v5  ;;  %v433_v20 = vadd.f32 %v432_v17, %v431_v15 }
 0x20e   :  { %v441_v16 = vpop.xlane.xlu0 %440 }
 0x20f   :  { %v224_v8 = vrot.slane %v223_v7, 1  ;;  %v442_v19 = vrot.slane %v441_v16, 4  ;;  %v434_v21 = vrot.slane %v433_v20, 2 }
 0x211   :  { %v225_v11 = vadd.f32 %v224_v8, %v223_v7  ;;  %v443_v55 = vadd.f32 %v442_v19, %v441_v16  ;;  %v435_v28 = vadd.f32 %v434_v21, %v433_v20 }
 0x212   :  { %v455_v37 = vpop.xlane.xlu0 %454 }
 0x213   :  { %600 = vpush %v225_v11  ;;  %v444_v23 = vrot.slane %v443_v55, 2  ;;  %v436_v44 = vrot.slane %v435_v28, 1  ;;  %v456_v38 = vrot.slane %v455_v37, 4 }
 0x215   :  { %v445_v30 = vadd.f32 %v444_v23, %v443_v55  ;;  %v437_v35 = vadd.f32 %v436_v44, %v435_v28  ;;  %v457_v39 = vadd.f32 %v456_v38, %v455_v37 }
 0x217   :  { %v446_v33 = vrot.slane %v445_v30, 1  ;;  %v458_v40 = vrot.slane %v457_v39, 2 }
 0x219   :  { %v447_v36 = vadd.f32 %v446_v33, %v445_v30  ;;  %v459_v42 = vadd.f32 %v458_v40, %v457_v39 }
 0x21b   :  { %v460_v43 = vrot.slane %v459_v42, 1 }
 0x21d   :  { %v461_v47 = vadd.f32 %v460_v43, %v459_v42 }
 0x244   :  { %s601_s1 = spop %600 }
 0x245   :  { %s227_s11 = smul.f32 0.0625, %s601_s1 }
 0x247   :  { %s411_s5 = smul.f32 0.7, %s227_s11 }
 0x278   :  { %v490_v56 = vpop.xlane.xlu0 %489 }
 0x279   :  { %v491_v58 = vrot.slane %v490_v56, 4 }
 0x27b   :  { %v492_v60 = vadd.f32 %v491_v58, %v490_v56 }
 0x27c   :  { %v529_v17 = vpop.xlane.xlu0 %528 }
 0x27d   :  { %v493_v63 = vrot.slane %v492_v60, 2  ;;  %v530_v20 = vrot.slane %v529_v17, 4 }
 0x27f   :  { %v494_v1 = vadd.f32 %v493_v63, %v492_v60  ;;  %v531_v21 = vadd.f32 %v530_v20, %v529_v17 }
 0x280   :  { %v402_v22 = vpop.xlane.xlu1 %401 }
 0x281   :  { %v403_v24 = vrot.slane %v402_v22, 4  ;;  %v495_v18 = vrot.slane %v494_v1, 1  ;;  %v532_v23 = vrot.slane %v531_v21, 2 }
 0x283   :  { %v404_v26 = vadd.f32 %v403_v24, %v402_v22  ;;  %v496_v5 = vadd.f32 %v495_v18, %v494_v1  ;;  %v533_v28 = vadd.f32 %v532_v23, %v531_v21 }
 0x284   :  { %v480_v54 = vpop.xlane.xlu1 %479 }
 0x285   :  { %v405_v29 = vrot.slane %v404_v26, 2  ;;  %v481_v57 = vrot.slane %v480_v54, 4  ;;  %v534_v30 = vrot.slane %v533_v28, 1 }
 0x287   :  { %v406_v31 = vadd.f32 %v405_v29, %v404_v26  ;;  %v482_v59 = vadd.f32 %v481_v57, %v480_v54 }
 0x288   :  { %v504_v6 = vpop.xlane.xlu1 %503 }
 0x289   :  { %v407_v32 = vrot.slane %v406_v31, 1  ;;  %v483_v61 = vrot.slane %v482_v59, 2  ;;  %v505_v7 = vrot.slane %v504_v6, 4 }
 0x28b   :  { %v408_v34 = vadd.f32 %v407_v32, %v406_v31  ;;  %v484_v0 = vadd.f32 %v483_v61, %v482_v59  ;;  %v506_v8 = vadd.f32 %v505_v7, %v504_v6  ;;  %v535_v32 = vadd.f32 %v534_v30, %v533_v28 }
 0x28c   :  { %v539_v19 = vpop.xlane.xlu1 %538 }
 0x28d   :  { %602 = vpush %v408_v34  ;;  %v485_v2 = vrot.slane %v484_v0, 1  ;;  %v507_v9 = vrot.slane %v506_v8, 2  ;;  %v540_v55 = vrot.slane %v539_v19, 4  ;;  %v553_v34 = vpop.xlane.xlu0 %552 }
 0x28e   :  { %606 = vpush %v437_v35  ;;  %v554_v35 = vrot.slane %v553_v34, 4 }
 0x28f   :  { %608 = vpush %v447_v36  ;;  %v486_v4 = vadd.f32 %v485_v2, %v484_v0  ;;  %v508_v12 = vadd.f32 %v507_v9, %v506_v8  ;;  %v541_v22 = vadd.f32 %v540_v55, %v539_v19 }
 0x290   :  { %v555_v36 = vadd.f32 %v554_v35, %v553_v34 }
 0x291   :  { %v509_v45 = vrot.slane %v508_v12, 1  ;;  %v542_v24 = vrot.slane %v541_v22, 2 }
 0x292   :  { %v556_v37 = vrot.slane %v555_v36, 2 }
 0x293   :  { %v510_v14 = vadd.f32 %v509_v45, %v508_v12  ;;  %v543_v29 = vadd.f32 %v542_v24, %v541_v22 }
 0x294   :  { %v557_v39 = vadd.f32 %v556_v37, %v555_v36 }
 0x295   :  { %v544_v31 = vrot.slane %v543_v29, 1 }
 0x296   :  { %v558_v40 = vrot.slane %v557_v39, 1 }
 0x297   :  { %v545_v33 = vadd.f32 %v544_v31, %v543_v29 }
 0x298   :  { %v559_v42 = vadd.f32 %v558_v40, %v557_v39 }
 0x2be   :  { %s603_s21 = spop %602 }
 0x2bf   :  { %s410_s0 = smul.f32 0.0625, %s603_s21  ;;  %s1173_s30 = spop %606 }
 0x2c0   :  { %s609_s16 = spop %608 }
 0x2c1   :  { %s412_s23 = smul.f32 0.3, %s410_s0  ;;  %v449_v41 = vstv %s609_s16 }
 0x2c2   :  { %711 = vrcp.f32 %v449_v41 }
 0x2c3   :  { %s413_s25 = sadd.f32 %s412_s23, %s411_s5 }
 0x2c5   :  { %427 = sst [smem:[#allocation16]] %s413_s25 }
 0x2cc   :  { %v712_v46 = vpop.eup %711 }
 0x2cd   :  { %610 = vpush %v712_v46 }
 0x2ce   :  { %612 = vpush %v461_v47 }
 0x2fe   :  { %s611_s26 = spop %610 }
 0x2ff   :  { %s613_s2 = spop %612  ;;  %s452_s22 = smul.f32 %s611_s26, %s1173_s30 }
 0x300   :  { %v463_v25 = vstv %s613_s2 }
 0x301   :  { %713 = vrcp.f32 %v463_v25 }
 0x30b   :  { %v714_v10 = vpop.eup %713 }
 0x30c   :  { %614 = vpush %v714_v10 }
 0x33d   :  { %s615_s27 = spop %614 }
 0x33e   :  { %s466_s29 = smul.f32 %s615_s27, %s1173_s30 }
 0x340   :  { %s469_s6 = sadd.f32 %s466_s29, %s452_s22  ;;  %s467_s7 = smul.f32 %s466_s29, %s452_s22 }
 0x342   :  { %s470_s28 = sadd.f32 1e-05, %s469_s6  ;;  %s468_s3 = smul.f32 2.0, %s467_s7 }
 0x344   :  { %v471_v62 = vstv %s470_s28 }
 0x345   :  { %715 = vrcp.f32 %v471_v62 }
 0x34f   :  { %v716_v3 = vpop.eup %715 }
 0x350   :  { %616 = vpush %v716_v3 }
 0x351   :  { %618 = vpush %v486_v4 }
 0x352   :  { %620 = vpush %v496_v5 }
 0x381   :  { %s617_s13 = spop %616 }
 0x382   :  { %s474_s14 = smul.f32 %s617_s13, %s468_s3  ;;  %s619_s15 = spop %618 }
 0x383   :  { %s621_s17 = spop %620  ;;  %s905_s13 = scalar_lea.hbm %s1207_s12, 16 }
 0x384   :  { %476 = sst [smem:[#allocation16 + $0x1]] %s474_s14  ;;  %v498_v11 = vstv %s621_s17  ;;  %p906_p8 = scmp.ne.s32.totalorder %s1207_s12, %s905_s13 }
 0x385   :  { %717 = vrcp.f32 %v498_v11  ;;  %p909_p9 = scmp.lt.u32.totalorder %s905_s13, %s1207_s12 }
 0x387   :  { %p911_p10 = pnand %p909_p9, %p906_p8 }
 0x38f   :  { %v718_v13 = vpop.eup %717 }
 0x390   :  { %622 = vpush %v718_v13 }
 0x391   :  { %624 = vpush %v510_v14 }
 0x3c1   :  { %s623_s10 = spop %622 }
 0x3c2   :  { %s625_s18 = spop %624  ;;  %s501_s19 = smul.f32 %s623_s10, %s619_s15 }
 0x3c3   :  { %v512_v15 = vstv %s625_s18 }
 0x3c4   :  { %719 = vrcp.f32 %v512_v15 }
 0x3ce   :  { %v720_v16 = vpop.eup %719 }
 0x3cf   :  { %626 = vpush %v720_v16 }
 0x400   :  { %s627_s4 = spop %626 }
 0x401   :  { %s515_s24 = smul.f32 %s627_s4, %s619_s15 }
 0x403   :  { %s518_s20 = sadd.f32 %s515_s24, %s501_s19  ;;  %s516_s9 = smul.f32 %s515_s24, %s501_s19 }
 0x405   :  { %s519_s8 = sadd.f32 1e-05, %s518_s20  ;;  %s517_s1 = smul.f32 2.0, %s516_s9 }
 0x407   :  { %v520_v26 = vstv %s519_s8 }
 0x408   :  { %721 = vrcp.f32 %v520_v26 }
 0x412   :  { %v722_v44 = vpop.eup %721 }
 0x413   :  { %628 = vpush %v722_v44 }
 0x414   :  { %630 = vpush %v535_v32 }
 0x415   :  { %632 = vpush %v545_v33 }
 0x444   :  { %s629_s11 = spop %628 }
 0x445   :  { %s523_s21 = smul.f32 %s629_s11, %s517_s1  ;;  %s631_s0 = spop %630 }
 0x446   :  { %s633_s30 = spop %632 }
 0x447   :  { %525 = sst [smem:[#allocation16 + $0x2]] %s523_s21  ;;  %v547_v38 = vstv %s633_s30 }
 0x448   :  { %723 = vrcp.f32 %v547_v38 }
 0x452   :  { %v724_v41 = vpop.eup %723 }
 0x453   :  { %634 = vpush %v724_v41 }
 0x454   :  { %636 = vpush %v559_v42 }
 0x484   :  { %s635_s5 = spop %634 }
 0x485   :  { %s637_s16 = spop %636  ;;  %s550_s23 = smul.f32 %s635_s5, %s631_s0 }
 0x486   :  { %v561_v43 = vstv %s637_s16 }
 0x487   :  { %725 = vrcp.f32 %v561_v43 }
 0x491   :  { %v726_v46 = vpop.eup %725 }
 0x492   :  { %638 = vpush %v726_v46 }
 0x4c3   :  { %s639_s25 = spop %638 }
 0x4c4   :  { %s564_s26 = smul.f32 %s639_s25, %s631_s0 }
 0x4c6   :  { %s567_s2 = sadd.f32 %s564_s26, %s550_s23  ;;  %s565_s27 = smul.f32 %s564_s26, %s550_s23 }
 0x4c8   :  { %s568_s22 = sadd.f32 1e-05, %s567_s2  ;;  %s566_s29 = smul.f32 2.0, %s565_s27 }
 0x4ca   :  { %v569_v47 = vstv %s568_s22 }
 0x4cb   :  { %727 = vrcp.f32 %v569_v47 }
 0x4d5   :  { %v728_v48 = vpop.eup %727 }
 0x4d6   :  { %640 = vpush %v728_v48 }
 0x507   :  { %s641_s6 = spop %640 }
 0x508   :  { %s572_s28 = smul.f32 %s641_s6, %s566_s29 }
 0x50a   :  { %574 = sst [smem:[#allocation16 + $0x3]] %s572_s28 }
 0x50b   :  { %914 = shalt.err (!%p911_p10)
}
 0x50c   :  { %s937_s18 = smov [#allocation16]  }
 0x50d   :  { %582 = dma.smem_to_hbm %s937_s18, 16, %s1207_s12, [#allocation4]  }
 0x50e   :  { %925 = dma.done.wait [#allocation4], 16  }
 0x50f   :  { %926 = vsyncadd [#allocation4], 4294967280 }
 0x510   :  { %586 = sfence }
 0x511   :  { %587 = vsyncpa [#allocation3], 1 }
 0x512   :  { %588 = vsyncpa [#allocation6], 1 }
 0x513   :  { %589 = vsyncpa [#allocation9], 1 }
 0x514   :  { %590 = vsyncpa [#allocation12], 1 }
 0x515   :  { %591 = vsyncpa [#allocation15], 1 }
 0x516   :  { %592 = vsyncpa [#allocation4], 1 }

</bundles_post_ra>
